<compile_context>
chip_gen: v6e
topology: v6e:2x2x1
jax: 0.10.0
libtpu: 0.0.40
codegen_flags: <defaults>
</compile_context>

<pallas_src>
import jax
import jax.numpy as jnp
from jax import lax
from jax.experimental import pallas as pl
from jax.experimental.pallas import tpu as pltpu

_LANE = 128          # lane width of a vreg (last dim)
_SUBLANE_BF16 = 16   # bf16 packs 16 sublanes per vreg


def _round_up(x, m):
    return (x + m - 1) // m * m


def _value_rnn_kernel(policy_ref, act_ref, h0_ref,
                      w_p_ref, w_a_ref, w_h_ref, b_z_ref, w_o_ref, b_o_ref,
                      val_ref, h_ref):
    """grid=(T,): one Elman-cell step + value head per grid iteration.

    Streamed per step (Pallas double-buffers these):
      policy_ref : (1, B_pad, P_pad) bf16
      act_ref    : (1, B_pad, 1)     int32 (padded rows hold -1 -> zero one-hot)
    Resident across the whole grid (DMA'd once):
      h0_ref  : (B_pad, H_pad) f32   initial hidden, read only at t == 0
      w_p_ref : (P_pad, H_pad) bf16  policy rows of W_ih
      w_a_ref : (A_pad, H_pad) bf16  one-hot rows of W_ih
      w_h_ref : (H_pad, H_pad) bf16  W_hh
      b_z_ref : (1, H_pad)     f32   b_ih + b_hh
      w_o_ref : (1, H_pad)     f32   value-head weight row (W_ho^T)
      b_o_ref : (1, 1)         f32   value-head bias
    Outputs:
      val_ref : (1, B_pad, 1)  f32   per-step value (streamed out)
      h_ref   : (B_pad, H_pad) f32   hidden; same block every step, so it stays
                                     VMEM-resident and doubles as the carry
    """
    t = pl.program_id(0)

    @pl.when(t == 0)
    def _():
        h_ref[...] = h0_ref[...]

    x = policy_ref[0]                                   # (B_pad, P_pad) bf16
    act = act_ref[0]                                    # (B_pad, 1) int32
    b_pad = x.shape[0]
    a_pad = w_a_ref.shape[0]

    # In-kernel one_hot(action): iota-vs-action compare, no HBM materialization.
    onehot = (lax.broadcasted_iota(jnp.int32, (b_pad, a_pad), 1) == act
              ).astype(jnp.bfloat16)                    # (B_pad, A_pad)

    h_prev = h_ref[...]                                 # f32 carry

    # Elman cell: bf16 MXU operands, f32 accumulation, f32 bias/tanh.
    pre = (jnp.dot(x, w_p_ref[...], preferred_element_type=jnp.float32)
           + jnp.dot(onehot, w_a_ref[...], preferred_element_type=jnp.float32)
           + jnp.dot(h_prev.astype(jnp.bfloat16), w_h_ref[...],
                     preferred_element_type=jnp.float32)
           + b_z_ref[...])
    h_new = jnp.tanh(pre)                               # (B_pad, H_pad) f32
    h_ref[...] = h_new

    # Value head (output_size == 1): VPU multiply + cross-lane reduce keeps the
    # single real column off the MXU critical path behind tanh.
    val_ref[0] = (jnp.sum(h_new * w_o_ref[...], axis=-1, keepdims=True)
                  + b_o_ref[...])


def init_value_net_params(key, hidden_policy_size, hidden_value_size, action_size):
    """PyTorch nn.Linear-style uniform init; padded/bf16 kernel blocks built once."""
    P, H, A = hidden_policy_size, hidden_value_size, action_size
    IN = P + A
    P_pad = _round_up(P, _LANE)
    A_pad = _round_up(A, _LANE)
    H_pad = _round_up(H, _LANE)

    ks = jax.random.split(key, 6)

    def lin(kw, kb, fan_in, fan_out):
        bound = 1.0 / (fan_in ** 0.5)
        w = jax.random.uniform(kw, (fan_in, fan_out), jnp.float32, -bound, bound)
        b = jax.random.uniform(kb, (fan_out,), jnp.float32, -bound, bound)
        return w, b

    w_ih, b_ih = lin(ks[0], ks[1], IN, H)    # (IN, H) — x @ W layout
    w_hh, b_hh = lin(ks[2], ks[3], H, H)
    w_ho, b_ho = lin(ks[4], ks[5], H, 1)

    w_p = jnp.zeros((P_pad, H_pad), jnp.bfloat16).at[:P, :H].set(
        w_ih[:P].astype(jnp.bfloat16))
    w_a = jnp.zeros((A_pad, H_pad), jnp.bfloat16).at[:A, :H].set(
        w_ih[P:].astype(jnp.bfloat16))
    w_h = jnp.zeros((H_pad, H_pad), jnp.bfloat16).at[:H, :H].set(
        w_hh.astype(jnp.bfloat16))
    b_z = jnp.zeros((1, H_pad), jnp.float32).at[0, :H].set(b_ih + b_hh)
    w_o = jnp.zeros((1, H_pad), jnp.float32).at[0, :H].set(w_ho[:, 0])
    b_o = jnp.asarray(b_ho, jnp.float32).reshape(1, 1)

    kernel_params = dict(w_p=w_p, w_a=w_a, w_h=w_h, b_z=b_z, w_o=w_o, b_o=b_o)
    logical_params = dict(w_ih=w_ih, b_ih=b_ih, w_hh=w_hh, b_hh=b_hh,
                          w_ho=w_ho, b_ho=b_ho)
    dims = dict(P=P, H=H, A=A, P_pad=P_pad, A_pad=A_pad, H_pad=H_pad)
    return kernel_params, logical_params, dims


def make_value_net(dims):
    """Returns (forward, rollout).

    forward(policynet (B,P), action (B,), hidden (B,H), params)
        -> (value (B,1), new_hidden (B,H))        [ValueNet.forward semantics]
    rollout(policy_seq (T,B,P), action_seq (T,B), hidden0 (B,H), params)
        -> (values (T,B,1), final_hidden (B,H))   [T-step loop inside the kernel]
    """
    P, H = dims["P"], dims["H"]
    P_pad, A_pad, H_pad = dims["P_pad"], dims["A_pad"], dims["H_pad"]

    @jax.jit
    def rollout(policy_seq, action_seq, hidden0, params):
        T, B = policy_seq.shape[0], policy_seq.shape[1]
        B_pad = _round_up(max(B, _SUBLANE_BF16), _SUBLANE_BF16)

        # Pad to lane/sublane-aligned tiles. Padded action rows are -1 so their
        # one-hot is all-zero; padded batch rows never feed real rows (the
        # recurrence is row-wise) and are sliced off below.
        p = jnp.zeros((T, B_pad, P_pad), jnp.bfloat16)
        p = p.at[:, :B, :P].set(policy_seq.astype(jnp.bfloat16))
        a = jnp.full((T, B_pad, 1), -1, jnp.int32)
        a = a.at[:, :B, 0].set(action_seq.astype(jnp.int32))
        h0 = jnp.zeros((B_pad, H_pad), jnp.float32)
        h0 = h0.at[:B, :H].set(hidden0.astype(jnp.float32))

        pinned = lambda t: (0, 0)
        vals, h_fin = pl.pallas_call(
            _value_rnn_kernel,
            grid=(T,),
            in_specs=[
                pl.BlockSpec((1, B_pad, P_pad), lambda t: (t, 0, 0)),   # policy
                pl.BlockSpec((1, B_pad, 1), lambda t: (t, 0, 0)),       # action
                pl.BlockSpec((B_pad, H_pad), pinned),                   # h0
                pl.BlockSpec((P_pad, H_pad), pinned),                   # w_p
                pl.BlockSpec((A_pad, H_pad), pinned),                   # w_a
                pl.BlockSpec((H_pad, H_pad), pinned),                   # w_h
                pl.BlockSpec((1, H_pad), pinned),                       # b_z
                pl.BlockSpec((1, H_pad), pinned),                       # w_o
                pl.BlockSpec((1, 1), pinned),                           # b_o
            ],
            out_specs=(
                pl.BlockSpec((1, B_pad, 1), lambda t: (t, 0, 0)),       # values
                pl.BlockSpec((B_pad, H_pad), pinned),                   # hidden
            ),
            out_shape=(
                jax.ShapeDtypeStruct((T, B_pad, 1), jnp.float32),
                jax.ShapeDtypeStruct((B_pad, H_pad), jnp.float32),
            ),
            compiler_params=pltpu.CompilerParams(
                dimension_semantics=("arbitrary",)),
        )(p, a, h0, params["w_p"], params["w_a"], params["w_h"],
          params["b_z"], params["w_o"], params["b_o"])

        return vals[:, :B, :], h_fin[:B, :H]

    @jax.jit
    def forward(policynet, action, hidden, params):
        vals, h_new = rollout(policynet[None], action[None], hidden, params)
        return vals[0], h_new

    return forward, rollout


if __name__ == "__main__":
    # Small shapes consistent with the module's forward.
    B, HIDDEN_POLICY, HIDDEN_VALUE, ACTION, T = 2, 32, 32, 4, 8

    key = jax.random.PRNGKey(0)
    k_par, k_p, k_a, k_h = jax.random.split(key, 4)

    kernel_params, logical_params, dims = init_value_net_params(
        k_par, HIDDEN_POLICY, HIDDEN_VALUE, ACTION)
    forward, rollout = make_value_net(dims)

    policy_seq = jax.random.normal(k_p, (T, B, HIDDEN_POLICY), jnp.float32)
    action_seq = jax.random.randint(k_a, (T, B), 0, ACTION, dtype=jnp.int32)
    hidden0 = jax.random.normal(k_h, (B, HIDDEN_VALUE), jnp.float32)

    # --- single-step: exact ValueNet.forward signature / semantics ---
    value, hidden1 = forward(policy_seq[0], action_seq[0], hidden0, kernel_params)
    jax.block_until_ready((value, hidden1))
    assert value.shape == (B, 1)
    assert hidden1.shape == (B, HIDDEN_VALUE)

    # --- multi-step rollout: time loop amortized inside the kernel grid ---
    values, hidden_T = rollout(policy_seq, action_seq, hidden0, kernel_params)
    jax.block_until_ready((values, hidden_T))
    assert values.shape == (T, B, 1)
    assert hidden_T.shape == (B, HIDDEN_VALUE)

    # Pure-JAX reference mirroring the kernel math (bf16 MXU operands, f32 acc,
    # f32 elementwise) so tolerances stay tight and deliberate.
    def ref_step(policy, action, hidden):
        onehot = jax.nn.one_hot(action, ACTION, dtype=jnp.float32)
        x = jnp.concatenate([policy, onehot], axis=1)
        pre = (jnp.dot(x.astype(jnp.bfloat16),
                       logical_params["w_ih"].astype(jnp.bfloat16),
                       preferred_element_type=jnp.float32)
               + jnp.dot(hidden.astype(jnp.bfloat16),
                         logical_params["w_hh"].astype(jnp.bfloat16),
                         preferred_element_type=jnp.float32)
               + logical_params["b_ih"] + logical_params["b_hh"])
        h = jnp.tanh(pre)
        v = (jnp.sum(h * logical_params["w_ho"][:, 0][None, :],
                     axis=-1, keepdims=True)
             + logical_params["b_ho"])
        return v, h

    v_ref, h_ref = ref_step(policy_seq[0], action_seq[0], hidden0)
    assert jnp.allclose(value, v_ref, atol=1e-3, rtol=1e-3)
    assert jnp.allclose(hidden1, h_ref, atol=1e-3, rtol=1e-3)

    h = hidden0
    vs = []
    for t in range(T):
        v, h = ref_step(policy_seq[t], action_seq[t], h)
        vs.append(v)
    v_seq_ref = jnp.stack(vs, axis=0)
    assert jnp.allclose(values, v_seq_ref, atol=2e-3, rtol=2e-3)
    assert jnp.allclose(hidden_T, h, atol=2e-3, rtol=2e-3)

    print("KERNEL_OK")
</pallas_src>

<mosaic_0001>
module attributes {stable_mosaic.version = 11 : i64} {
  func.func @_value_rnn_kernel(%arg0: i32, %arg1: memref<1x16x128xbf16, #tpu.memory_space<vmem>>, %arg2: memref<1x16x1xi32, #tpu.memory_space<vmem>>, %arg3: memref<16x128xf32, #tpu.memory_space<vmem>>, %arg4: memref<128x128xbf16, #tpu.memory_space<vmem>>, %arg5: memref<128x128xbf16, #tpu.memory_space<vmem>>, %arg6: memref<128x128xbf16, #tpu.memory_space<vmem>>, %arg7: memref<1x128xf32, #tpu.memory_space<vmem>>, %arg8: memref<1x128xf32, #tpu.memory_space<vmem>>, %arg9: memref<1x1xf32, #tpu.memory_space<vmem>>, %arg10: memref<1x16x1xf32, #tpu.memory_space<vmem>>, %arg11: memref<16x128xf32, #tpu.memory_space<vmem>>) attributes {dimension_semantics = [#tpu.dimension_semantics<arbitrary>], iteration_bounds = array<i64: 1>, scalar_prefetch = 0 : i64, scratch_operands = 0 : i64, tpu.core_type = #tpu.core_type<tc>, window_params = [{transform_indices = @transform_0, window_bounds = array<i64: 1, 16, 128>}, {transform_indices = @transform_1, window_bounds = array<i64: 1, 16, 1>}, {pipeline_mode = #tpu.pipeline_mode<synchronous>, transform_indices = @transform_2, window_bounds = array<i64: 16, 128>}, {pipeline_mode = #tpu.pipeline_mode<synchronous>, transform_indices = @transform_3, window_bounds = array<i64: 128, 128>}, {pipeline_mode = #tpu.pipeline_mode<synchronous>, transform_indices = @transform_4, window_bounds = array<i64: 128, 128>}, {pipeline_mode = #tpu.pipeline_mode<synchronous>, transform_indices = @transform_5, window_bounds = array<i64: 128, 128>}, {pipeline_mode = #tpu.pipeline_mode<synchronous>, transform_indices = @transform_6, window_bounds = array<i64: 1, 128>}, {pipeline_mode = #tpu.pipeline_mode<synchronous>, transform_indices = @transform_7, window_bounds = array<i64: 1, 128>}, {pipeline_mode = #tpu.pipeline_mode<synchronous>, transform_indices = @transform_8, window_bounds = array<i64: 1, 1>}, {transform_indices = @transform_9, window_bounds = array<i64: 1, 16, 1>}, {pipeline_mode = #tpu.pipeline_mode<synchronous>, transform_indices = @transform_10, window_bounds = array<i64: 16, 128>}]} {
    %c0_i32 = arith.constant 0 : i32
    %0 = arith.cmpi eq, %arg0, %c0_i32 : i32
    %1 = arith.extui %0 : i1 to i32
    %c0_i32_0 = arith.constant 0 : i32
    %2 = arith.cmpi ne, %1, %c0_i32_0 : i32
    scf.if %2 {
      %c0_28 = arith.constant 0 : index
      %c0_29 = arith.constant 0 : index
      %39 = vector.load %arg3[%c0_28, %c0_29] : memref<16x128xf32, #tpu.memory_space<vmem>>, vector<16x128xf32>
      %c0_30 = arith.constant 0 : index
      %c0_31 = arith.constant 0 : index
      %40 = vector.load %arg11[%c0_30, %c0_31] : memref<16x128xf32, #tpu.memory_space<vmem>>, vector<16x128xf32>
      tpu.vector_store %arg11[%c0_30, %c0_31], %39 {strides = array<i32>} : memref<16x128xf32, #tpu.memory_space<vmem>>, vector<16x128xf32>,
    } else {
    }
    %c0 = arith.constant 0 : index
    %c0_1 = arith.constant 0 : index
    %c0_2 = arith.constant 0 : index
    %3 = vector.load %arg1[%c0, %c0_1, %c0_2] : memref<1x16x128xbf16, #tpu.memory_space<vmem>>, vector<1x16x128xbf16>
    %4 = vector.shape_cast %3 : vector<1x16x128xbf16> to vector<16x128xbf16>
    %c0_3 = arith.constant 0 : index
    %c0_4 = arith.constant 0 : index
    %c0_5 = arith.constant 0 : index
    %5 = vector.load %arg2[%c0_3, %c0_4, %c0_5] : memref<1x16x1xi32, #tpu.memory_space<vmem>>, vector<1x16x1xi32>
    %6 = vector.shape_cast %5 : vector<1x16x1xi32> to vector<16x1xi32>
    %7 = tpu.iota {dimensions = array<i32: 1>} : vector<16x128xi32>
    %8 = vector.broadcast %6 : vector<16x1xi32> to vector<16x128xi32>
    %9 = arith.cmpi eq, %7, %8 : vector<16x128xi32>
    %10 = arith.extui %9 : vector<16x128xi1> to vector<16x128xi32>
    %11 = arith.sitofp %10 : vector<16x128xi32> to vector<16x128xf32>
    %12 = arith.truncf %11 : vector<16x128xf32> to vector<16x128xbf16>
    %c0_6 = arith.constant 0 : index
    %c0_7 = arith.constant 0 : index
    %13 = vector.load %arg11[%c0_6, %c0_7] : memref<16x128xf32, #tpu.memory_space<vmem>>, vector<16x128xf32>
    %c0_8 = arith.constant 0 : index
    %c0_9 = arith.constant 0 : index
    %14 = vector.load %arg4[%c0_8, %c0_9] : memref<128x128xbf16, #tpu.memory_space<vmem>>, vector<128x128xbf16>
    %cst = arith.constant dense<0.000000e+00> : vector<16x128xf32>
    %15 = tpu.matmul %4, %14, %cst {dimension_numbers = #tpu.dot_dimension_numbers<[1], [0], [0], [1], [0, 0, 1, 1], [], []>} : vector<16x128xbf16>, vector<128x128xbf16>, vector<16x128xf32> -> vector<16x128xf32>
    %c0_10 = arith.constant 0 : index
    %c0_11 = arith.constant 0 : index
    %16 = vector.load %arg5[%c0_10, %c0_11] : memref<128x128xbf16, #tpu.memory_space<vmem>>, vector<128x128xbf16>
    %cst_12 = arith.constant dense<0.000000e+00> : vector<16x128xf32>
    %17 = tpu.matmul %12, %16, %cst_12 {dimension_numbers = #tpu.dot_dimension_numbers<[1], [0], [0], [1], [0, 0, 1, 1], [], []>} : vector<16x128xbf16>, vector<128x128xbf16>, vector<16x128xf32> -> vector<16x128xf32>
    %18 = arith.addf %15, %17 : vector<16x128xf32>
    %19 = arith.truncf %13 : vector<16x128xf32> to vector<16x128xbf16>
    %c0_13 = arith.constant 0 : index
    %c0_14 = arith.constant 0 : index
    %20 = vector.load %arg6[%c0_13, %c0_14] : memref<128x128xbf16, #tpu.memory_space<vmem>>, vector<128x128xbf16>
    %cst_15 = arith.constant dense<0.000000e+00> : vector<16x128xf32>
    %21 = tpu.matmul %19, %20, %cst_15 {dimension_numbers = #tpu.dot_dimension_numbers<[1], [0], [0], [1], [0, 0, 1, 1], [], []>} : vector<16x128xbf16>, vector<128x128xbf16>, vector<16x128xf32> -> vector<16x128xf32>
    %22 = arith.addf %18, %21 : vector<16x128xf32>
    %c0_16 = arith.constant 0 : index
    %c0_17 = arith.constant 0 : index
    %23 = vector.load %arg7[%c0_16, %c0_17] : memref<1x128xf32, #tpu.memory_space<vmem>>, vector<1x128xf32>
    %24 = vector.broadcast %23 : vector<1x128xf32> to vector<16x128xf32>
    %25 = arith.addf %22, %24 : vector<16x128xf32>
    %26 = math.tanh %25 : vector<16x128xf32>
    %c0_18 = arith.constant 0 : index
    %c0_19 = arith.constant 0 : index
    %27 = vector.load %arg11[%c0_18, %c0_19] : memref<16x128xf32, #tpu.memory_space<vmem>>, vector<16x128xf32>
    tpu.vector_store %arg11[%c0_18, %c0_19], %26 {strides = array<i32>} : memref<16x128xf32, #tpu.memory_space<vmem>>, vector<16x128xf32>,
    %c0_20 = arith.constant 0 : index
    %c0_21 = arith.constant 0 : index
    %28 = vector.load %arg8[%c0_20, %c0_21] : memref<1x128xf32, #tpu.memory_space<vmem>>, vector<1x128xf32>
    %29 = vector.broadcast %28 : vector<1x128xf32> to vector<16x128xf32>
    %30 = arith.mulf %26, %29 : vector<16x128xf32>
    %cst_22 = arith.constant dense<0.000000e+00> : vector<16xf32>
    %31 = vector.multi_reduction <add>, %30, %cst_22 [1] : vector<16x128xf32> to vector<16xf32>
    %32 = vector.shape_cast %31 : vector<16xf32> to vector<16x1xf32>
    %c0_23 = arith.constant 0 : index
    %c0_24 = arith.constant 0 : index
    %33 = vector.load %arg9[%c0_23, %c0_24] : memref<1x1xf32, #tpu.memory_space<vmem>>, vector<1x1xf32>
    %34 = vector.broadcast %33 : vector<1x1xf32> to vector<16x1xf32>
    %35 = arith.addf %32, %34 : vector<16x1xf32>
    %c0_25 = arith.constant 0 : index
    %c0_26 = arith.constant 0 : index
    %c0_27 = arith.constant 0 : index
    %36 = vector.load %arg10[%c0_25, %c0_26, %c0_27] : memref<1x16x1xf32, #tpu.memory_space<vmem>>, vector<1x16x1xf32>
    %37 = vector.shape_cast %36 : vector<1x16x1xf32> to vector<16x1xf32>
    %38 = vector.shape_cast %35 : vector<16x1xf32> to vector<1x16x1xf32>
    tpu.vector_store %arg10[%c0_25, %c0_26, %c0_27], %38 {strides = array<i32>} : memref<1x16x1xf32, #tpu.memory_space<vmem>>, vector<1x16x1xf32>,
    return
  }
  func.func @transform_0(%arg0: i32) -> (i32, i32, i32) {
    %c0_i32 = arith.constant 0 : i32
    %c0_i32_0 = arith.constant 0 : i32
    %c0_i32_1 = arith.constant 0 : i32
    return %arg0, %c0_i32, %c0_i32_0 : i32, i32, i32
  }
  func.func @transform_1(%arg0: i32) -> (i32, i32, i32) {
    %c0_i32 = arith.constant 0 : i32
    %c0_i32_0 = arith.constant 0 : i32
    %c0_i32_1 = arith.constant 0 : i32
    return %arg0, %c0_i32, %c0_i32_0 : i32, i32, i32
  }
  func.func @transform_2(%arg0: i32) -> (i32, i32) {
    %c0_i32 = arith.constant 0 : i32
    %c0_i32_0 = arith.constant 0 : i32
    %c0_i32_1 = arith.constant 0 : i32
    return %c0_i32, %c0_i32_0 : i32, i32
  }
  func.func @transform_3(%arg0: i32) -> (i32, i32) {
    %c0_i32 = arith.constant 0 : i32
    %c0_i32_0 = arith.constant 0 : i32
    %c0_i32_1 = arith.constant 0 : i32
    return %c0_i32, %c0_i32_0 : i32, i32
  }
  func.func @transform_4(%arg0: i32) -> (i32, i32) {
    %c0_i32 = arith.constant 0 : i32
    %c0_i32_0 = arith.constant 0 : i32
    %c0_i32_1 = arith.constant 0 : i32
    return %c0_i32, %c0_i32_0 : i32, i32
  }
  func.func @transform_5(%arg0: i32) -> (i32, i32) {
    %c0_i32 = arith.constant 0 : i32
    %c0_i32_0 = arith.constant 0 : i32
    %c0_i32_1 = arith.constant 0 : i32
    return %c0_i32, %c0_i32_0 : i32, i32
  }
  func.func @transform_6(%arg0: i32) -> (i32, i32) {
    %c0_i32 = arith.constant 0 : i32
    %c0_i32_0 = arith.constant 0 : i32
    %c0_i32_1 = arith.constant 0 : i32
    return %c0_i32, %c0_i32_0 : i32, i32
  }
  func.func @transform_7(%arg0: i32) -> (i32, i32) {
    %c0_i32 = arith.constant 0 : i32
    %c0_i32_0 = arith.constant 0 : i32
    %c0_i32_1 = arith.constant 0 : i32
    return %c0_i32, %c0_i32_0 : i32, i32
  }
  func.func @transform_8(%arg0: i32) -> (i32, i32) {
    %c0_i32 = arith.constant 0 : i32
    %c0_i32_0 = arith.constant 0 : i32
    %c0_i32_1 = arith.constant 0 : i32
    return %c0_i32, %c0_i32_0 : i32, i32
  }
  func.func @transform_9(%arg0: i32) -> (i32, i32, i32) {
    %c0_i32 = arith.constant 0 : i32
    %c0_i32_0 = arith.constant 0 : i32
    %c0_i32_1 = arith.constant 0 : i32
    return %arg0, %c0_i32, %c0_i32_0 : i32, i32, i32
  }
  func.func @transform_10(%arg0: i32) -> (i32, i32) {
    %c0_i32 = arith.constant 0 : i32
    %c0_i32_0 = arith.constant 0 : i32
    %c0_i32_1 = arith.constant 0 : i32
    return %c0_i32, %c0_i32_0 : i32, i32
  }
}

</mosaic_0001>

<bundles_post_ra>
// kernel: rollout.1
= control target key start
LH: loop header
LB: loop body
LE: loop exit
PB: predicated region body
PF: predicated region fallthrough
CT: control target
= control target key end

     0   :  { %s826_s0 = inlined_call_operand.vmem [shape: bf16[1,16,128], index: 0, kind: input, shape index: {}]   ;;  %s827_s1 = inlined_call_operand.vmem [shape: s32[1,16,1], index: 1, kind: input, shape index: {}]   ;;  %s828_s2 = inlined_call_operand.vmem [shape: f32[16,128], index: 2, kind: input, shape index: {}]   ;;  %s829_s3 = inlined_call_operand.vmem [shape: bf16[128,128], index: 3, kind: input, shape index: {}]   ;;  %s830_s4 = inlined_call_operand.hbm [shape: bf16[128,128], index: 4, kind: input, shape index: {}]   ;;  %s831_s5 = inlined_call_operand.hbm [shape: bf16[128,128], index: 5, kind: input, shape index: {}]   ;;  %s832_s6 = inlined_call_operand.vmem [shape: f32[1,128], index: 6, kind: input, shape index: {}]   ;;  %s833_s7 = inlined_call_operand.vmem [shape: f32[1,128], index: 7, kind: input, shape index: {}]   ;;  %s834_s8 = inlined_call_operand.<no memory space> [shape: f32[1,1], index: 8, kind: input, shape index: {}]   ;;  %s835_s9 = inlined_call_operand.vmem [shape: f32[1,16,1], index: 9, kind: output, shape index: {0}]   ;;  %s836_s10 = inlined_call_operand.vmem [shape: f32[16,128], index: 10, kind: output, shape index: {1}]  }
   0x1   :  { %v16_v0 = vstv %s834_s8 }
   0x2   :  { %17 = vst [vmem:[#allocation2] sm:$0x1] %v16_v0 }
   0x3   :  { %18 = vsyncpa [#allocation4], 0 }
   0x4   :  { %19 = vsyncpa [#allocation6], 0  ;;  %s667_s15 = smov [#allocation3]  }
   0x5   :  { %s33_s16 = sshll.u32 %s667_s15, 4  ;;  %s34_s16 = int_to_ptr.vmem [resolvable:$true] %s33_s16 }
   0x6   :  { %s631_s17 = scalar_lea.vmem %s34_s16, 1024  ;;  %p636_p1 = scmp.lt.s32.totalorder %s34_s16, %s34_s16 }
   0x7   :  { %p632_p0 = scmp.ne.s32.totalorder %s34_s16, %s631_s17  ;;  %p637_p2 = scmp.lt.s32.totalorder %s631_s17, %s631_s17 }
   0x9   :  { %p638_p3 = por %p637_p2, %p636_p1 }
   0xb   :  { %p639_p4 = pnand %p638_p3, %p632_p0 }
   0xd   :  { %642 = shalt.err (!%p639_p4)
}
   0xe   :  { %s668_s18 = smov 64   ;;  %s669_s19 = smov 4  }
   0xf   :  { %39 = dma.hbm_to_vmem [thread:$0]  %s830_s4, 1024, %s34_s16, [#allocation4], %s668_s18, %s668_s18, %s669_s19  }
  0x10   :  { %s670_s8 = smov [#allocation5]  }
  0x11   :  { %s45_s22 = sshll.u32 %s670_s8, 4  ;;  %s46_s22 = int_to_ptr.vmem [resolvable:$true] %s45_s22 }
  0x12   :  { %s651_s23 = scalar_lea.vmem %s46_s22, 1024  ;;  %p656_p6 = scmp.lt.s32.totalorder %s46_s22, %s46_s22 }
  0x13   :  { %p652_p5 = scmp.ne.s32.totalorder %s46_s22, %s651_s23  ;;  %p657_p7 = scmp.lt.s32.totalorder %s651_s23, %s651_s23 }
  0x15   :  { %p658_p8 = por %p657_p7, %p656_p6 }
  0x17   :  { %p659_p9 = pnand %p658_p8, %p652_p5 }
  0x19   :  { %662 = shalt.err (!%p659_p9)
}
  0x1a   :  { %51 = dma.hbm_to_vmem [thread:$0]  %s831_s5, 1024, %s46_s22, [#allocation6], %s668_s18, %s668_s18, %s669_s19  }
  0x1b   :  { %663 = dma.done.wait [#allocation4], 1024  }
  0x1c   :  { %664 = vsyncadd [#allocation4], 4294966272 }
  0x1d   :  { %665 = dma.done.wait [#allocation6], 1024  }
  0x1e   :  { %666 = vsyncadd [#allocation6], 4294966272  ;;  %v671_v1 = vmov 0   ;;  %v672_v2 = vmov 0.0   ;;  %v75_v3 = vld [vmem:[%s827_s1] sm:$0xff]  ;;  %v76_v4 = vld [vmem:[%s827_s1 + $0x8] sm:$0xff]  ;;  %v77_v22 = vlaneseq }
  0x1f   :  { %593 = vset.pattern.permute.xlu0 %v671_v1  ;;  %525 = vmatprep.subr.bf16.mxu0 %v672_v2  ;;  %v594_v5 = vld [vmem:[#allocation3 + $0x38] sm:$0xff]   ;;  %vm673_vm0 = vmmov 0   ;;  %v596_v7 = vld [vmem:[#allocation3 + $0x30] sm:$0xff]   ;;  %v598_v9 = vld [vmem:[#allocation3 + $0x28] sm:$0xff]   ;;  %v674_v27 = vmov 1.0|1.0  }
  0x20   :  { %545 = vmatprep.subr.bf16.mxu1 %v672_v2  ;;  %80 = vperm.xlu0 %593, %v75_v3   ;;  %v595_v6 = vld [vmem:[%s829_s3 + $0x38] sm:$0xff]   ;;  %v597_v8 = vld [vmem:[%s829_s3 + $0x30] sm:$0xff]   ;;  %v599_v10 = vld [vmem:[%s829_s3 + $0x28] sm:$0xff]   ;;  %v78_v24 = vand.u32 127, %v77_v22  ;;  %vm453_vm4 = vcmask 7168  }
  0x21   :  { %541 = vmatprep.mubr.msk.bf16.mxu0 %vm673_vm0, %v672_v2  ;;  %561 = vmatprep.mubr.msk.bf16.mxu1 %vm673_vm0, %v672_v2  ;;  %v600_v11 = vld [vmem:[#allocation3 + $0x20] sm:$0xff]   ;;  %v602_v13 = vld [vmem:[#allocation3 + $0x18] sm:$0xff]   ;;  %v604_v15 = vld [vmem:[#allocation3 + $0x10] sm:$0xff]  }
  0x22   :  { %526 = vmatpush3.bf16.msra.mxu0 %v594_v5  ;;  %546 = vmatpush3.bf16.msra.mxu1 %v595_v6  ;;  %v601_v12 = vld [vmem:[%s829_s3 + $0x20] sm:$0xff]   ;;  %v603_v14 = vld [vmem:[%s829_s3 + $0x18] sm:$0xff]   ;;  %v605_v16 = vld [vmem:[%s829_s3 + $0x10] sm:$0xff]  }
  0x23   :  { %527 = vmatprep.subr.bf16.mxu0 %v672_v2  ;;  %547 = vmatprep.subr.bf16.mxu1 %v672_v2  ;;  %v606_v17 = vld [vmem:[#allocation3 + $0x8] sm:$0xff]   ;;  %v608_v19 = vld [vmem:[#allocation3] sm:$0xff]   ;;  %v611_v26 = vld [vmem:[#allocation5 + $0x38] sm:$0xff]  }
  0x24   :  { %83 = vperm.xlu0 %593, %v76_v4   ;;  %v607_v18 = vld [vmem:[%s829_s3 + $0x8] sm:$0xff]   ;;  %v609_v20 = vld [vmem:[%s829_s3] sm:$0xff]   ;;  %v612_v28 = vld [vmem:[#allocation5 + $0x30] sm:$0xff]  }
  0x25   :  { %v610_v21 = vld [vmem:[%s826_s0] sm:$0xff]   ;;  %v613_v29 = vld [vmem:[#allocation5 + $0x28] sm:$0xff]   ;;  %v616_v32 = vld [vmem:[#allocation5 + $0x10] sm:$0xff]  }
  0x26   :  { %528 = vmatpush3.bf16.msra.mxu0 %v596_v7  ;;  %548 = vmatpush3.bf16.msra.mxu1 %v597_v8  ;;  %v614_v30 = vld [vmem:[#allocation5 + $0x20] sm:$0xff]   ;;  %v615_v31 = vld [vmem:[#allocation5 + $0x18] sm:$0xff]   ;;  %v617_v33 = vld [vmem:[#allocation5 + $0x8] sm:$0xff]  }
  0x27   :  { %529 = vmatprep.subr.bf16.mxu0 %v672_v2  ;;  %549 = vmatprep.subr.bf16.mxu1 %v672_v2  ;;  %v618_v34 = vld [vmem:[#allocation5] sm:$0xff]   ;;  %v495_v48 = vld [vmem:[%s832_s6] ss:$0 sm:$0xff] }
  0x28   :  { %v69_v35 = vld [vmem:[%s828_s2] sm:$0xff]  ;;  %v70_v36 = vld [vmem:[%s828_s2 + $0x8] sm:$0xff] }
  0x29   :  { %v310_v37 = vpack.c.bf16 %v70_v36, %v69_v35  ;;  %v496_v57 = vld [vmem:[%s833_s7] ss:$0 sm:$0xff] }
  0x2a   :  { %530 = vmatpush3.bf16.msra.mxu0 %v598_v9  ;;  %550 = vmatpush3.bf16.msra.mxu1 %v599_v10  ;;  %v497_v62 = vld [vmem:[#allocation2] ss:$0 sm:$0xff] }
  0x2b   :  { %531 = vmatprep.subr.bf16.mxu0 %v672_v2  ;;  %551 = vmatprep.subr.bf16.mxu1 %v672_v2 }
  0x2e   :  { %532 = vmatpush3.bf16.msra.mxu0 %v600_v11  ;;  %552 = vmatpush3.bf16.msra.mxu1 %v601_v12 }
  0x2f   :  { %533 = vmatprep.subr.bf16.mxu0 %v672_v2  ;;  %553 = vmatprep.subr.bf16.mxu1 %v672_v2 }
  0x32   :  { %534 = vmatpush3.bf16.msra.mxu0 %v602_v13  ;;  %554 = vmatpush3.bf16.msra.mxu1 %v603_v14 }
  0x33   :  { %535 = vmatprep.subr.bf16.mxu0 %v672_v2  ;;  %555 = vmatprep.subr.bf16.mxu1 %v672_v2 }
  0x36   :  { %536 = vmatpush3.bf16.msra.mxu0 %v604_v15  ;;  %556 = vmatpush3.bf16.msra.mxu1 %v605_v16 }
  0x37   :  { %537 = vmatprep.subr.bf16.mxu0 %v672_v2  ;;  %557 = vmatprep.subr.bf16.mxu1 %v672_v2 }
  0x3a   :  { %538 = vmatpush3.bf16.msra.mxu0 %v606_v17  ;;  %558 = vmatpush3.bf16.msra.mxu1 %v607_v18 }
  0x3b   :  { %539 = vmatprep.subr.bf16.mxu0 %v672_v2  ;;  %559 = vmatprep.subr.bf16.mxu1 %v672_v2 }
  0x3e   :  { %540 = vmatpush3.bf16.msra.mxu0 %v608_v19  ;;  %560 = vmatpush3.bf16.msra.mxu1 %v609_v20 }
  0x3f   :  { %565 = vmatprep.subr.bf16.mxu0 %v672_v2 }
  0x41   :  { %562 = vmatmul.mubr.bf16.vlgmr.msra.gmra.mxu1 %v610_v21 }
  0x9b   :  { %v81_v23 = vpop.permute.xlu0 %80 }
  0x9c   :  { %vm85_vm1 = vcmp.eq.s32.totalorder %v78_v24, %v81_v23 }
  0x9f   :  { %v84_v25 = vpop.permute.xlu0 %83 }
  0xa0   :  { %vm86_vm2 = vcmp.eq.s32.totalorder %v78_v24, %v84_v25 }
  0xa1   :  { %vm476_vm3 = vmpackc.low %vm86_vm2, %vm85_vm1 }
  0xa2   :  { %542 = vmatmul.mubr.msk.bf16.vlgmr.msra.gmra.mxu0 %vm476_vm3, %v674_v27 }
  0xa3   :  { %566 = vmatpush3.bf16.msra.mxu0 %v611_v26  ;;  %581 = vmatprep.mubr.msk.bf16.mxu0 %vm673_vm0, %v672_v2 }
  0xa4   :  { %567 = vmatprep.subr.bf16.mxu0 %v672_v2 }
  0xa7   :  { %568 = vmatpush3.bf16.msra.mxu0 %v612_v28 }
  0xa8   :  { %569 = vmatprep.subr.bf16.mxu0 %v672_v2 }
  0xab   :  { %570 = vmatpush3.bf16.msra.mxu0 %v613_v29 }
  0xac   :  { %571 = vmatprep.subr.bf16.mxu0 %v672_v2 }
  0xaf   :  { %572 = vmatpush3.bf16.msra.mxu0 %v614_v30 }
  0xb0   :  { %573 = vmatprep.subr.bf16.mxu0 %v672_v2 }
  0xb3   :  { %574 = vmatpush3.bf16.msra.mxu0 %v615_v31 }
  0xb4   :  { %575 = vmatprep.subr.bf16.mxu0 %v672_v2 }
  0xb7   :  { %576 = vmatpush3.bf16.msra.mxu0 %v616_v32 }
  0xb8   :  { %577 = vmatprep.subr.bf16.mxu0 %v672_v2 }
  0xbb   :  { %578 = vmatpush3.bf16.msra.mxu0 %v617_v33 }
  0xbc   :  { %579 = vmatprep.subr.bf16.mxu0 %v672_v2 }
  0xbf   :  { %580 = vmatpush3.bf16.msra.mxu0 %v618_v34 }
  0xc2   :  { %582 = vmatmul.mubr.bf16.vlgmr.msra.gmra.mxu0 %v310_v37 }
 0x101   :  { %v303_v38 = vpop.f32.mrf.mxu1 }
 0x103   :  { %v563_v39 = vpop.f32.mrf.mxu1 }
 0x105   :  { %v306_v40 = vpop.f32.mrf.mxu1 }
 0x107   :  { %v564_v41 = vpop.f32.mrf.mxu1 }
 0x162   :  { %v208_v42 = vpop.f32.mrf.mxu0 }
 0x163   :  { %v304_v46 = vadd.f32 %v303_v38, %v208_v42 }
 0x164   :  { %v543_v43 = vpop.f32.mrf.mxu0 }
 0x166   :  { %v211_v44 = vpop.f32.mrf.mxu0 }
 0x167   :  { %v307_v51 = vadd.f32 %v306_v40, %v211_v44 }
 0x168   :  { %v544_v45 = vpop.f32.mrf.mxu0 }
 0x182   :  { %v409_v47 = vpop.f32.mrf.mxu0 }
 0x183   :  { %v416_v49 = vadd.f32 %v409_v47, %v304_v46 }
 0x184   :  { %v583_v50 = vpop.f32.mrf.mxu0 }
 0x185   :  { %v425_v52 = vadd.f32 %v495_v48, %v416_v49 }
 0x186   :  { %v412_v53 = vpop.f32.mrf.mxu0 }
 0x187   :  { %619 = vtanh.f32 %v425_v52  ;;  %v417_v54 = vadd.f32 %v412_v53, %v307_v51 }
 0x188   :  { %v584_v55 = vpop.f32.mrf.mxu0 }
 0x189   :  { %v426_v56 = vadd.f32 %v495_v48, %v417_v54 }
 0x18b   :  { %621 = vtanh.f32 %v426_v56 }
 0x194   :  { %v620_v58 = vpop.eup %619 }
 0x195   :  { %429 = vst [vmem:[%s836_s10] sm:$0xff] %v620_v58  ;;  %v438_v59 = vmul.f32 %v620_v58, %v496_v57 }
 0x197   :  { %440 = vadd.xlane.f32.xlu1 %v438_v59 }
 0x198   :  { %v622_v60 = vpop.eup %621 }
 0x199   :  { %430 = vst [vmem:[%s836_s10 + $0x8] sm:$0xff] %v622_v60  ;;  %v439_v61 = vmul.f32 %v622_v60, %v496_v57 }
 0x19b   :  { %442 = vadd.xlane.f32.xlu1 %v439_v61 }
 0x220   :  { %v441_v63 = vpop.xlane.xlu1 %440 }
 0x221   :  { %v451_v0 = vadd.f32 %v497_v62, %v441_v63 }
 0x223   :  { %454 = vst.msk [vmem:[%s835_s9] sm:$0xff] %vm453_vm4, %v451_v0 }
 0x224   :  { %v443_v1 = vpop.xlane.xlu1 %442 }
 0x225   :  { %v452_v2 = vadd.f32 %v497_v62, %v443_v1 }
 0x227   :  { %455 = vst.msk [vmem:[%s835_s9 + $0x8] sm:$0xff] %vm453_vm4, %v452_v2 }
 0x228   :  { %464 = vsyncpa [#allocation4], 1 }
 0x229   :  { %465 = vsyncpa [#allocation6], 1 }

</bundles_post_ra>
